<compile_context>
chip_gen: v7x
topology: tpu7x:2x2x1
jax: 0.10.0
libtpu: 0.0.40
codegen_flags: <defaults>
</compile_context>

<pallas_src>
import jax
import jax.numpy as jnp
from jax.experimental import pallas as pl
from jax.experimental.pallas import tpu as pltpu
from functools import partial


def _sum_rl(v):
    # reduce over the (rows, lanes) axes of a (TB, R, L) tile -> (TB, 1, 1)
    return jnp.sum(jnp.sum(v, axis=2, keepdims=True), axis=1, keepdims=True)


def _layernorm_kernel(x_ref, gamma_ref, beta_ref, o_ref, *, eps, n):
    # x_ref/o_ref: (TB, R, L)   gamma_ref/beta_ref: (R, 1)
    x = x_ref[...].astype(jnp.float32)

    # --- single-pass per-sample statistics over the (R, L) axes ---
    s = _sum_rl(x)                       # (TB, 1, 1)
    ss = _sum_rl(x * x)                  # (TB, 1, 1)
    mean = s * (1.0 / n)
    # unbiased variance (Bessel's correction) — matches torch.Tensor.std default
    var = (ss - s * mean) / (n - 1)
    var = jnp.maximum(var, 0.0)          # guard tiny negative cancellation
    std = jnp.sqrt(var)
    inv = 1.0 / (std + eps)              # eps OUTSIDE the sqrt (module semantics)

    # --- fold normalization into the per-channel affine: y = x*scale + shift ---
    gamma = gamma_ref[...].astype(jnp.float32)   # (R, 1)
    beta = beta_ref[...].astype(jnp.float32)     # (R, 1)
    scale = gamma[None, :, :] * inv              # (TB, R, 1)
    shift = beta[None, :, :] - mean * scale      # (TB, R, 1)

    o_ref[...] = (x * scale + shift).astype(o_ref.dtype)


def _largest_divisor_leq(b, cap):
    cap = max(1, min(b, int(cap)))
    for d in range(cap, 0, -1):
        if b % d == 0:
            return d
    return 1


def layer_norm(x, gamma=None, beta=None, *, eps=1e-5):
    """x: (B, C, H, W) NCHW. gamma, beta: (C,) or None. Returns (B, C, H, W)."""
    B, C, H, W = x.shape
    HW = H * W
    n = C * HW  # elements per sample (statistics over all non-batch dims)

    if gamma is None:
        gamma = jnp.ones((C,), dtype=x.dtype)
    if beta is None:
        beta = jnp.zeros((C,), dtype=x.dtype)

    # Lane/sublane-dense layout when possible: each 128-wide row of the
    # flattened sample belongs to exactly one channel, so the per-channel
    # affine becomes a per-row affine.
    if HW % 128 == 0:
        L = 128
        reps = HW // L
        R = C * reps
        x2 = x.reshape(B, R, L)
        gamma2 = jnp.repeat(gamma, reps).reshape(R, 1)
        beta2 = jnp.repeat(beta, reps).reshape(R, 1)
    else:
        R, L = C, HW
        x2 = x.reshape(B, R, L)
        gamma2 = gamma.reshape(R, 1)
        beta2 = beta.reshape(R, 1)

    itemsize = jnp.dtype(x.dtype).itemsize
    bytes_per_sample = max(1, R * L * itemsize)

    # ~6 MiB per block -> double-buffered in+out footprint stays < ~24 MiB,
    # which fits comfortably on v7x (64 MiB VMEM) as well as v5e/v6e (128 MiB).
    block_budget = 6 * 1024 * 1024
    tb = _largest_divisor_leq(B, block_budget // bytes_per_sample)
    # Prefer >= 2 grid steps (v7x megacore: 2 TCs) when blocks stay big enough
    # that per-step overhead remains amortized.
    if tb == B and B > 1:
        half = _largest_divisor_leq(B, B // 2)
        if half * bytes_per_sample >= (1 << 20):
            tb = half

    grid = (B // tb,)
    block_bytes = tb * bytes_per_sample
    vmem_limit = int(min(56 * 1024 * 1024,
                         max(32 * 1024 * 1024, 4 * block_bytes + (4 << 20))))

    cost = pl.CostEstimate(
        flops=5 * B * n,                                  # x*x, 2 reduce-adds, 1 FMA
        transcendentals=B,                                # sqrt per sample
        bytes_accessed=2 * B * n * itemsize + 2 * R * 4,  # read + write + params
    )

    out = pl.pallas_call(
        partial(_layernorm_kernel, eps=eps, n=n),
        out_shape=jax.ShapeDtypeStruct((B, R, L), x.dtype),
        grid_spec=pltpu.PrefetchScalarGridSpec(
            num_scalar_prefetch=0,
            grid=grid,
            in_specs=[
                pl.BlockSpec((tb, R, L), lambda b: (b, 0, 0)),
                pl.BlockSpec((R, 1), lambda b: (0, 0)),
                pl.BlockSpec((R, 1), lambda b: (0, 0)),
            ],
            out_specs=pl.BlockSpec((tb, R, L), lambda b: (b, 0, 0)),
        ),
        compiler_params=pltpu.CompilerParams(
            dimension_semantics=("parallel",),
            vmem_limit_bytes=vmem_limit,
        ),
        cost_estimate=cost,
    )(x2, gamma2, beta2)

    return out.reshape(B, C, H, W)


def _reference(x, gamma, beta, eps=1e-5):
    # Pure-JAX reference mirroring the PyTorch module (the batch == 1 branch of
    # the module computes the same per-sample statistics as the batch > 1 one).
    B = x.shape[0]
    xf = x.reshape(B, -1).astype(jnp.float32)
    mean = xf.mean(axis=1)
    var = jnp.sum((xf - mean[:, None]) ** 2, axis=1) / (xf.shape[1] - 1)  # unbiased
    std = jnp.sqrt(var)
    shape = (B,) + (1,) * (x.ndim - 1)
    y = (x - mean.reshape(shape)) / (std.reshape(shape) + eps)
    gshape = (1, -1) + (1,) * (x.ndim - 2)
    return y * gamma.reshape(gshape) + beta.reshape(gshape)


if __name__ == "__main__":
    key = jax.random.PRNGKey(0)
    k_x, k_g = jax.random.split(key)

    B, C, H, W = 2, 4, 16, 16
    x = jax.random.normal(k_x, (B, C, H, W), dtype=jnp.float32)
    # Matches torch init: gamma ~ Uniform[0,1), beta = zeros
    gamma = jax.random.uniform(k_g, (C,), dtype=jnp.float32)
    beta = jnp.zeros((C,), dtype=jnp.float32)

    out = layer_norm(x, gamma, beta, eps=1e-5)
    out = jax.block_until_ready(out)

    ref = _reference(x, gamma, beta, eps=1e-5)
    assert out.shape == (B, C, H, W)
    assert jnp.allclose(out, ref, atol=1e-5, rtol=1e-5), "mismatch vs reference"

    print("KERNEL_OK")
</pallas_src>

<mosaic_0001>
module attributes {stable_mosaic.version = 11 : i64} {
  func.func @_layernorm_kernel(%arg0: i32, %arg1: memref<2x8x128xf32, #tpu.memory_space<vmem>>, %arg2: memref<8x1xf32, #tpu.memory_space<vmem>>, %arg3: memref<8x1xf32, #tpu.memory_space<vmem>>, %arg4: memref<2x8x128xf32, #tpu.memory_space<vmem>>) attributes {dimension_semantics = [#tpu.dimension_semantics<parallel>], iteration_bounds = array<i64: 1>, scalar_prefetch = 0 : i64, scratch_operands = 0 : i64, tpu.core_type = #tpu.core_type<tc>, window_params = [{transform_indices = @transform_0, window_bounds = array<i64: 2, 8, 128>}, {pipeline_mode = #tpu.pipeline_mode<synchronous>, transform_indices = @transform_1, window_bounds = array<i64: 8, 1>}, {pipeline_mode = #tpu.pipeline_mode<synchronous>, transform_indices = @transform_2, window_bounds = array<i64: 8, 1>}, {transform_indices = @transform_3, window_bounds = array<i64: 2, 8, 128>}]} {
    %c0 = arith.constant 0 : index
    %c0_0 = arith.constant 0 : index
    %c0_1 = arith.constant 0 : index
    %0 = vector.load %arg1[%c0, %c0_0, %c0_1] : memref<2x8x128xf32, #tpu.memory_space<vmem>>, vector<2x8x128xf32>
    %cst = arith.constant dense<0.000000e+00> : vector<2x8xf32>
    %1 = vector.multi_reduction <add>, %0, %cst [2] : vector<2x8x128xf32> to vector<2x8xf32>
    %2 = vector.shape_cast %1 : vector<2x8xf32> to vector<2x8x1xf32>
    %cst_2 = arith.constant dense<0.000000e+00> : vector<2x1xf32>
    %3 = vector.multi_reduction <add>, %2, %cst_2 [1] : vector<2x8x1xf32> to vector<2x1xf32>
    %4 = vector.shape_cast %3 : vector<2x1xf32> to vector<2x1x1xf32>
    %5 = arith.mulf %0, %0 : vector<2x8x128xf32>
    %cst_3 = arith.constant dense<0.000000e+00> : vector<2x8xf32>
    %6 = vector.multi_reduction <add>, %5, %cst_3 [2] : vector<2x8x128xf32> to vector<2x8xf32>
    %7 = vector.shape_cast %6 : vector<2x8xf32> to vector<2x8x1xf32>
    %cst_4 = arith.constant dense<0.000000e+00> : vector<2x1xf32>
    %8 = vector.multi_reduction <add>, %7, %cst_4 [1] : vector<2x8x1xf32> to vector<2x1xf32>
    %9 = vector.shape_cast %8 : vector<2x1xf32> to vector<2x1x1xf32>
    %cst_5 = arith.constant 9.765625E-4 : f32
    %10 = vector.broadcast %cst_5 : f32 to vector<2x1x1xf32>
    %11 = arith.mulf %4, %10 : vector<2x1x1xf32>
    %12 = arith.mulf %4, %11 : vector<2x1x1xf32>
    %13 = arith.subf %9, %12 : vector<2x1x1xf32>
    %cst_6 = arith.constant 1.023000e+03 : f32
    %14 = vector.broadcast %cst_6 : f32 to vector<2x1x1xf32>
    %15 = arith.divf %13, %14 : vector<2x1x1xf32>
    %cst_7 = arith.constant 0.000000e+00 : f32
    %16 = vector.broadcast %cst_7 : f32 to vector<2x1x1xf32>
    %17 = arith.maximumf %15, %16 : vector<2x1x1xf32>
    %18 = math.sqrt %17 : vector<2x1x1xf32>
    %cst_8 = arith.constant 9.99999974E-6 : f32
    %19 = vector.broadcast %cst_8 : f32 to vector<2x1x1xf32>
    %20 = arith.addf %18, %19 : vector<2x1x1xf32>
    %cst_9 = arith.constant 1.000000e+00 : f32
    %21 = vector.broadcast %cst_9 : f32 to vector<2x1x1xf32>
    %22 = arith.divf %21, %20 : vector<2x1x1xf32>
    %c0_10 = arith.constant 0 : index
    %c0_11 = arith.constant 0 : index
    %23 = vector.load %arg2[%c0_10, %c0_11] : memref<8x1xf32, #tpu.memory_space<vmem>>, vector<8x1xf32>
    %c0_12 = arith.constant 0 : index
    %c0_13 = arith.constant 0 : index
    %24 = vector.load %arg3[%c0_12, %c0_13] : memref<8x1xf32, #tpu.memory_space<vmem>>, vector<8x1xf32>
    %25 = vector.shape_cast %23 : vector<8x1xf32> to vector<1x8x1xf32>
    %26 = vector.broadcast %25 : vector<1x8x1xf32> to vector<2x8x1xf32>
    %27 = vector.broadcast %22 : vector<2x1x1xf32> to vector<2x8x1xf32>
    %28 = arith.mulf %26, %27 : vector<2x8x1xf32>
    %29 = vector.shape_cast %24 : vector<8x1xf32> to vector<1x8x1xf32>
    %30 = vector.broadcast %11 : vector<2x1x1xf32> to vector<2x8x1xf32>
    %31 = arith.mulf %30, %28 : vector<2x8x1xf32>
    %32 = vector.broadcast %29 : vector<1x8x1xf32> to vector<2x8x1xf32>
    %33 = arith.subf %32, %31 : vector<2x8x1xf32>
    %34 = vector.broadcast %28 : vector<2x8x1xf32> to vector<2x8x128xf32>
    %35 = arith.mulf %0, %34 : vector<2x8x128xf32>
    %36 = vector.broadcast %33 : vector<2x8x1xf32> to vector<2x8x128xf32>
    %37 = arith.addf %35, %36 : vector<2x8x128xf32>
    %c0_14 = arith.constant 0 : index
    %c0_15 = arith.constant 0 : index
    %c0_16 = arith.constant 0 : index
    %38 = vector.load %arg4[%c0_14, %c0_15, %c0_16] : memref<2x8x128xf32, #tpu.memory_space<vmem>>, vector<2x8x128xf32>
    tpu.vector_store %arg4[%c0_14, %c0_15, %c0_16], %37 {strides = array<i32>} : memref<2x8x128xf32, #tpu.memory_space<vmem>>, vector<2x8x128xf32>,
    return
  }
  func.func @transform_0(%arg0: i32) -> (i32, i32, i32) {
    %c0_i32 = arith.constant 0 : i32
    %c0_i32_0 = arith.constant 0 : i32
    %c0_i32_1 = arith.constant 0 : i32
    return %arg0, %c0_i32, %c0_i32_0 : i32, i32, i32
  }
  func.func @transform_1(%arg0: i32) -> (i32, i32) {
    %c0_i32 = arith.constant 0 : i32
    %c0_i32_0 = arith.constant 0 : i32
    %c0_i32_1 = arith.constant 0 : i32
    return %c0_i32, %c0_i32_0 : i32, i32
  }
  func.func @transform_2(%arg0: i32) -> (i32, i32) {
    %c0_i32 = arith.constant 0 : i32
    %c0_i32_0 = arith.constant 0 : i32
    %c0_i32_1 = arith.constant 0 : i32
    return %c0_i32, %c0_i32_0 : i32, i32
  }
  func.func @transform_3(%arg0: i32) -> (i32, i32, i32) {
    %c0_i32 = arith.constant 0 : i32
    %c0_i32_0 = arith.constant 0 : i32
    %c0_i32_1 = arith.constant 0 : i32
    return %arg0, %c0_i32, %c0_i32_0 : i32, i32, i32
  }
}

</mosaic_0001>

<bundles_post_ra>
// kernel: tpu_custom_call.1
= control target key start
LH: loop header
LB: loop body
LE: loop exit
PB: predicated region body
PF: predicated region fallthrough
CT: control target
= control target key end

     0   :  { %s230_s0 = inlined_call_operand.vmem [shape: f32[2,8,128], index: 0, kind: input, shape index: {}]   ;;  %s231_s1 = inlined_call_operand.vmem [shape: f32[8,1], index: 1, kind: input, shape index: {}]   ;;  %s232_s2 = inlined_call_operand.vmem [shape: f32[8,1], index: 2, kind: input, shape index: {}]   ;;  %s233_s3 = inlined_call_operand.hbm [shape: f32[2,8,128], index: 3, kind: output, shape index: {}]  }
   0x1   :  { %v197_v0 = vld [vmem:[%s230_s0] sm:$0xff]  ;;  %v202_v1 = vld [vmem:[%s230_s0 + $0x8] sm:$0xff] }
   0x2   :  { %8 = vsyncpa [#allocation3], 0  ;;  %17 = vadd.xlane.f32.xlu0 %v197_v0  ;;  %v33_v2 = vmul.f32 %v197_v0, %v197_v0  ;;  %v34_v3 = vmul.f32 %v202_v1, %v202_v1  ;;  %v170_v4 = vmov 0   ;;  %v82_v55 = vld [vmem:[%s231_s1] sm:$0xff]  ;;  %s171_s1 = smov [#allocation2]  }
   0x3   :  { %136 = vset.pattern.permute.xlu0 %v170_v4  ;;  %137 = vset.pattern.permute.xlu1 %v170_v4  ;;  %v83_v61 = vld [vmem:[%s232_s2] sm:$0xff]  ;;  %s121_s19 = sshll.u32 %s171_s1, 4  ;;  %s122_s19 = int_to_ptr.vmem [resolvable:$true] %s121_s19 }
   0x4   :  { %35 = vadd.xlane.f32.xlu1 %v33_v2  ;;  %s146_s2 = scalar_lea.vmem %s122_s19, 256  ;;  %p151_p1 = scmp.lt.s32.totalorder %s122_s19, %s122_s19 }
   0x5   :  { %p147_p0 = scmp.ne.s32.totalorder %s122_s19, %s146_s2  ;;  %p152_p2 = scmp.lt.s32.totalorder %s146_s2, %s146_s2 }
   0x6   :  { %19 = vadd.xlane.f32.xlu0 %v202_v1 }
   0x7   :  { %p153_p3 = por %p152_p2, %p151_p1 }
   0x8   :  { %37 = vadd.xlane.f32.xlu1 %v34_v3 }
   0x9   :  { %p154_p4 = pnand %p153_p3, %p147_p0 }
  0x8f   :  { %v18_v5 = vpop.xlane.xlu0 %17 }
  0x90   :  { %v21_v6 = vrot.slane %v18_v5, 4 }
  0x91   :  { %v36_v7 = vpop.xlane.xlu1 %35 }
  0x92   :  { %v22_v8 = vadd.f32 %v21_v6, %v18_v5  ;;  %v39_v9 = vrot.slane %v36_v7, 4 }
  0x93   :  { %v20_v10 = vpop.xlane.xlu0 %19 }
  0x94   :  { %v23_v11 = vrot.slane %v22_v8, 2  ;;  %v40_v12 = vadd.f32 %v39_v9, %v36_v7  ;;  %v27_v13 = vrot.slane %v20_v10, 4 }
  0x95   :  { %v38_v14 = vpop.xlane.xlu1 %37 }
  0x96   :  { %v24_v15 = vadd.f32 %v23_v11, %v22_v8  ;;  %v41_v16 = vrot.slane %v40_v12, 2  ;;  %v28_v17 = vadd.f32 %v27_v13, %v20_v10  ;;  %v45_v18 = vrot.slane %v38_v14, 4 }
  0x98   :  { %v25_v19 = vrot.slane %v24_v15, 1  ;;  %v42_v20 = vadd.f32 %v41_v16, %v40_v12  ;;  %v29_v21 = vrot.slane %v28_v17, 2  ;;  %v46_v22 = vadd.f32 %v45_v18, %v38_v14 }
  0x9a   :  { %v26_v23 = vadd.f32 %v25_v19, %v24_v15  ;;  %v43_v24 = vrot.slane %v42_v20, 1  ;;  %v30_v25 = vadd.f32 %v29_v21, %v28_v17  ;;  %v47_v26 = vrot.slane %v46_v22, 2 }
  0x9c   :  { %v51_v27 = vmul.f32 0.0009765625, %v26_v23  ;;  %v31_v28 = vrot.slane %v30_v25, 1  ;;  %v48_v29 = vadd.f32 %v47_v26, %v46_v22  ;;  %v44_v31 = vadd.f32 %v43_v24, %v42_v20 }
  0x9e   :  { %v53_v30 = vmul.f32 %v51_v27, %v26_v23  ;;  %v32_v32 = vadd.f32 %v31_v28, %v30_v25  ;;  %v49_v33 = vrot.slane %v48_v29, 1 }
  0xa0   :  { %v55_v34 = vsub.f32 %v44_v31, %v53_v30  ;;  %v52_v35 = vmul.f32 0.0009765625, %v32_v32  ;;  %v50_v38 = vadd.f32 %v49_v33, %v48_v29 }
  0xa2   :  { %v58_v36 = vmul.f32 0.0009775171, %v55_v34  ;;  %v54_v37 = vmul.f32 %v52_v35, %v32_v32 }
  0xa4   :  { %v60_v39 = vmax.f32 %v58_v36, 0.0  ;;  %v56_v40 = vsub.f32 %v50_v38, %v54_v37 }
  0xa6   :  { %138 = vrsqrt.f32 %v60_v39  ;;  %v59_v41 = vmul.f32 0.0009775171, %v56_v40  ;;  %vm64_vm0 = vcmp.eq.f32.partialorder %v60_v39, inf  ;;  %v67_v45 = vand.u32 2147483648, %v60_v39 }
  0xa7   :  { %vm66_vm1 = vcmp.eq.f32.partialorder %v60_v39, 0.0 }
  0xa8   :  { %v61_v42 = vmax.f32 %v59_v41, 0.0 }
  0xaa   :  { %140 = vrsqrt.f32 %v61_v42  ;;  %vm71_vm2 = vcmp.eq.f32.partialorder %v61_v42, inf  ;;  %v74_v51 = vand.u32 2147483648, %v61_v42  ;;  %vm73_vm3 = vcmp.eq.f32.partialorder %v61_v42, 0.0 }
  0xb0   :  { %v139_v43 = vpop.eup %138 }
  0xb1   :  { %v63_v44 = vmul.f32 %v139_v43, %v60_v39 }
  0xb3   :  { %v65_v46 = vsel %vm64_vm0, %v60_v39, %v63_v44 }
  0xb4   :  { %v141_v47 = vpop.eup %140  ;;  %v68_v48 = vsel %vm66_vm1, %v67_v45, %v65_v46 }
  0xb5   :  { %v76_v49 = vadd.f32 1e-05, %v68_v48  ;;  %v70_v50 = vmul.f32 %v141_v47, %v61_v42 }
  0xb7   :  { %142 = vrcp.f32 %v76_v49  ;;  %v72_v52 = vsel %vm71_vm2, %v61_v42, %v70_v50 }
  0xb8   :  { %v75_v53 = vsel %vm73_vm3, %v74_v51, %v72_v52 }
  0xb9   :  { %v77_v54 = vadd.f32 1e-05, %v75_v53 }
  0xbb   :  { %144 = vrcp.f32 %v77_v54 }
  0xc1   :  { %v143_v56 = vpop.eup %142 }
  0xc2   :  { %v84_v57 = vmul.f32 %v143_v56, %v82_v55 }
  0xc4   :  { %92 = vperm.xlu0 %136, %v84_v57   ;;  %v86_v60 = vmul.f32 %v84_v57, %v51_v27 }
  0xc5   :  { %v145_v58 = vpop.eup %144 }
  0xc6   :  { %v85_v59 = vmul.f32 %v145_v58, %v82_v55  ;;  %v88_v62 = vsub.f32 %v83_v61, %v86_v60 }
  0xc8   :  { %97 = vperm.xlu1 %137, %v85_v59   ;;  %v87_v63 = vmul.f32 %v85_v59, %v52_v35 }
  0xca   :  { %v89_v2 = vsub.f32 %v83_v61, %v87_v63 }
  0xcc   :  { %104 = vperm.xlu1 %137, %v88_v62  }
  0xd0   :  { %109 = vperm.xlu1 %137, %v89_v2  }
 0x143   :  { %v93_v3 = vpop.permute.xlu0 %92 }
 0x144   :  { %v100_v5 = vmul.f32 %v93_v3, %v197_v0 }
 0x147   :  { %v98_v4 = vpop.permute.xlu1 %97 }
 0x148   :  { %v101_v8 = vmul.f32 %v98_v4, %v202_v1 }
 0x14b   :  { %v105_v6 = vpop.permute.xlu1 %104 }
 0x14c   :  { %v112_v7 = vadd.f32 %v105_v6, %v100_v5 }
 0x14e   :  { %114 = vst [vmem:[#allocation2] sm:$0xff] %v112_v7 }
 0x14f   :  { %v110_v9 = vpop.permute.xlu1 %109 }
 0x150   :  { %v113_v10 = vadd.f32 %v110_v9, %v101_v8 }
 0x152   :  { %115 = vst [vmem:[#allocation2 + $0x8] sm:$0xff] %v113_v10 }
 0x153   :  { %157 = shalt.err (!%p154_p4)
}
 0x154   :  { %s158_s22 = scalar_lea.hbm %s233_s3, 256 }
 0x155   :  { %p159_p5 = scmp.ne.s32.totalorder %s233_s3, %s158_s22  ;;  %p162_p6 = scmp.lt.u32.totalorder %s158_s22, %s233_s3 }
 0x157   :  { %p164_p7 = pnand %p162_p6, %p159_p5 }
 0x159   :  { %167 = shalt.err (!%p164_p7)
}
 0x15a   :  { %s172_s27 = smov 128   ;;  %s173_s28 = smov 8  }
 0x15b   :  { %127 = dma.vmem_to_hbm [thread:$0]  %s122_s19, 256, %s233_s3, [#allocation3], %s172_s27, %s172_s27, %s173_s28  }
 0x15c   :  { %168 = dma.done.wait [#allocation3], 256  }
 0x15d   :  { %169 = vsyncadd [#allocation3], 4294967040 }
 0x15e   :  { %131 = vsyncpa [#allocation3], 1 }

</bundles_post_ra>
